<compile_context>
chip_gen: v7x
topology: tpu7x:2x2x1
jax: 0.10.0
libtpu: 0.0.40
codegen_flags: <defaults>
</compile_context>

<pallas_src>
import math
import jax
import jax.numpy as jnp
import numpy as np
from jax.experimental import pallas as pl
from jax.experimental.pallas import tpu as pltpu  # noqa: F401  (kept for TPU-specific tuning)

# ----- small, self-consistent ModelArgs -----
DIM = 48
N_HEADS = 3
HEAD_DIM = DIM // N_HEADS          # 16
N_KV_HEADS = N_HEADS               # n_rep = 1 -> repeat_kv is identity
MULTIPLE_OF = 32
NORM_EPS = 1e-5
HIDDEN_DIM = MULTIPLE_OF * ((int(2 * (4 * DIM) / 3) + MULTIPLE_OF - 1) // MULTIPLE_OF)  # 128
BATCH = 2
SEQ = 8
START_POS = 0
BS = BATCH * SEQ                   # 16 flattened tokens
QKV_COLS = 5 * DIM + 16            # [Q|K|Qswap|Kswap|V|0pad] = 256 (two full vregs)
FUSED = N_HEADS * BS               # 48 fused score columns (head-major)
NEG_INF = -1e30


def _rmsnorm(x, w, eps):
    return w * (x * jax.lax.rsqrt(jnp.mean(x * x, axis=-1, keepdims=True) + eps))


def encoder_block_kernel(x_ref, anw_ref, fnw_ref, wqkv_ref, wo_ref, w13_ref, w2_ref,
                         cos_ref, sin_ref, bias_ref, kvmask_ref, segmask_ref, out_ref):
    x = x_ref[...]                                          # (BS, D)
    xn = _rmsnorm(x, anw_ref[...], NORM_EPS)                # attention_norm

    # Fused lane-dense projection: [Q | K | Qswap | Kswap | V | 0pad] -> (BS, 256).
    # f32 operands, DEFAULT matmul precision (explicit choice; error budget in header).
    qkv = jnp.dot(xn, wqkv_ref[...], preferred_element_type=jnp.float32)

    # RoPE: one full-width FMA over the concatenated [Q|K] half-split block, using the
    # pre-swapped [Qswap|Kswap] columns emitted by the same matmul. Pure VPU work.
    qk_rot = qkv[:, :2 * DIM] * cos_ref[...] + qkv[:, 2 * DIM:4 * DIM] * sin_ref[...]
    q_rot = qk_rot[:, :DIM]                                 # (BS, D)
    k_rot = qk_rot[:, DIM:2 * DIM]                          # (BS, D)
    v = qkv[:, 4 * DIM:5 * DIM]                             # (BS, D)

    kvmask = kvmask_ref[...]                                # (FUSED, D) head block-diag 0/1
    # Block-diagonal K: ONE fused score matmul for all heads (single implicit transpose).
    kbig = jnp.concatenate([k_rot] * N_HEADS, axis=0) * kvmask          # (FUSED, D)
    scale = 1.0 / math.sqrt(HEAD_DIM)
    s = jax.lax.dot_general(q_rot, kbig, (((1,), (1,)), ((), ())),
                            preferred_element_type=jnp.float32) * scale + bias_ref[...]

    # Segmented (per-head-block, per-batch) softmax on the fused (BS, FUSED) score matrix.
    # A shared per-row max is a valid shift for every block; the per-block sums are broadcast
    # back to full width by one small matmul against the block-diag ones mask.
    m = jnp.max(s, axis=-1, keepdims=True)
    e = jnp.exp(s - m)                                      # masked (-1e30) cols underflow to 0
    denom = jnp.dot(e, segmask_ref[...], preferred_element_type=jnp.float32)
    p = e * pl.reciprocal(denom, approx=True)               # approximate recip (EUP), documented

    # Block-diagonal V: ONE fused P@V; head outputs land lane-contiguous -> no concatenate.
    vbig = jnp.concatenate([v] * N_HEADS, axis=0) * kvmask              # (FUSED, D)
    o = jnp.dot(p, vbig, preferred_element_type=jnp.float32)            # (BS, D)
    attn = jnp.dot(o, wo_ref[...], preferred_element_type=jnp.float32)  # (BS, D)

    h = x + attn
    hn = _rmsnorm(h, fnw_ref[...], NORM_EPS)                # ffn_norm
    f13 = jnp.dot(hn, w13_ref[...], preferred_element_type=jnp.float32)  # (BS, 2*HIDDEN)
    a = f13[:, :HIDDEN_DIM]
    b = f13[:, HIDDEN_DIM:]
    g = a * pl.reciprocal(1.0 + jnp.exp(-a), approx=True) * b            # silu(w1 x) * (w3 x)
    ffn = jnp.dot(g, w2_ref[...], preferred_element_type=jnp.float32)    # (BS, D)
    out_ref[...] = h + ffn


@jax.jit
def encoder_block_pallas(x, anw, fnw, wqkv, wo_k, w13, w2_k, cos96, sin96, bias48,
                         kvmask, segmask):
    B, S, D = x.shape
    x2 = x.reshape(B * S, D)

    flops = (2 * BS * DIM * QKV_COLS            # fused QKV (+swapped copies, +pad)
             + 2 * BS * DIM * FUSED             # fused scores
             + 2 * BS * FUSED * FUSED           # segmented-softmax block sums
             + 2 * BS * FUSED * DIM             # fused P@V
             + 2 * BS * DIM * DIM               # WO
             + 2 * BS * DIM * (2 * HIDDEN_DIM)  # fused W1 || W3
             + 2 * BS * HIDDEN_DIM * DIM        # W2
             + 64 * BS * DIM)                   # elementwise
    transcendentals = 2 * BS * FUSED + BS * HIDDEN_DIM + 4 * BS
    bytes_accessed = 4 * (2 * BS * DIM + DIM * QKV_COLS + DIM * DIM + 3 * DIM * HIDDEN_DIM
                          + 2 * BS * 2 * DIM + BS * FUSED + 2 * FUSED * DIM + 2 * DIM)

    out2 = pl.pallas_call(
        encoder_block_kernel,
        out_shape=jax.ShapeDtypeStruct((B * S, D), jnp.float32),
        cost_estimate=pl.CostEstimate(flops=flops, transcendentals=transcendentals,
                                      bytes_accessed=bytes_accessed),
    )(x2, anw, fnw, wqkv, wo_k, w13, w2_k, cos96, sin96, bias48, kvmask, segmask)
    return out2.reshape(B, S, D)


# ---------- pure-JAX reference (mirrors the PyTorch math, interleaved RoPE) ----------
def ref_encoder_block(x, wq, wk, wv, wo, w1, w2, w3, anw, fnw, cos, sin):
    def rms(t, w):
        return w * (t * jax.lax.rsqrt(jnp.mean(t * t, axis=-1, keepdims=True) + NORM_EPS))

    B, S, D = x.shape
    xn = rms(x, anw)
    q = (xn @ wq.T).reshape(B, S, N_HEADS, HEAD_DIM)
    k = (xn @ wk.T).reshape(B, S, N_KV_HEADS, HEAD_DIM)
    v = (xn @ wv.T).reshape(B, S, N_KV_HEADS, HEAD_DIM)

    def rope(t):
        te, to = t[..., 0::2], t[..., 1::2]
        c = cos[None, :, None, :]
        s = sin[None, :, None, :]
        re = te * c - to * s
        ro = te * s + to * c
        return jnp.stack([re, ro], axis=-1).reshape(t.shape)

    qr, kr = rope(q), rope(k)
    scores = jnp.einsum('bshd,bthd->bhst', qr, kr) / math.sqrt(HEAD_DIM)
    attn = jax.nn.softmax(scores, axis=-1)
    o = jnp.einsum('bhst,bthd->bshd', attn, v).reshape(B, S, D)
    h = x + o @ wo.T
    hn = rms(h, fnw)
    ffn = (jax.nn.silu(hn @ w1.T) * (hn @ w3.T)) @ w2.T
    return h + ffn


if __name__ == "__main__":
    key = jax.random.PRNGKey(0)
    ks = jax.random.split(key, 8)
    init = lambda k, shape: jax.random.normal(k, shape, jnp.float32) * 0.05

    # PyTorch nn.Linear layout: (out_features, in_features), bias=False
    wq = init(ks[0], (N_HEADS * HEAD_DIM, DIM))
    wk = init(ks[1], (N_KV_HEADS * HEAD_DIM, DIM))
    wv = init(ks[2], (N_KV_HEADS * HEAD_DIM, DIM))
    wo = init(ks[3], (DIM, N_HEADS * HEAD_DIM))
    w1 = init(ks[4], (HIDDEN_DIM, DIM))
    w2 = init(ks[5], (DIM, HIDDEN_DIM))
    w3 = init(ks[6], (HIDDEN_DIM, DIM))
    anw = jnp.ones((DIM,), jnp.float32)   # attention_norm.weight
    fnw = jnp.ones((DIM,), jnp.float32)   # ffn_norm.weight

    x = jax.random.normal(ks[7], (BATCH, SEQ, DIM), jnp.float32)

    # freqs_complex -> cos/sin, positions start_pos .. start_pos+SEQ-1
    theta = 1.0 / (10000.0 ** (jnp.arange(0, HEAD_DIM, 2, dtype=jnp.float32) / HEAD_DIM))
    pos = jnp.arange(SEQ, dtype=jnp.float32) + START_POS
    angles = pos[:, None] * theta[None, :]          # (S, HEAD_DIM//2)
    cos, sin = jnp.cos(angles), jnp.sin(angles)

    # ---- kernel-layout weights (fused, pre-transposed, RoPE half-split permuted) ----
    perm_half = np.concatenate([np.arange(0, HEAD_DIM, 2), np.arange(1, HEAD_DIM, 2)])
    perm_swap = np.concatenate([np.arange(1, HEAD_DIM, 2), np.arange(0, HEAD_DIM, 2)])

    def qk_layouts(w):                              # (H*Dh, D) -> two (D, H*Dh) layouts
        wt = jnp.transpose(w).reshape(DIM, N_HEADS, HEAD_DIM)
        w_half = wt[:, :, perm_half].reshape(DIM, N_HEADS * HEAD_DIM)   # [evens | odds]
        w_swap = wt[:, :, perm_swap].reshape(DIM, N_HEADS * HEAD_DIM)   # [odds | evens]
        return w_half, w_swap

    wq_h, wq_s = qk_layouts(wq)
    wk_h, wk_s = qk_layouts(wk)
    wv_t = jnp.transpose(wv)                                            # (D, H*Dh), natural
    pad = jnp.zeros((DIM, QKV_COLS - 5 * DIM), jnp.float32)             # 240 -> 256 columns
    wqkv = jnp.concatenate([wq_h, wk_h, wq_s, wk_s, wv_t, pad], axis=-1)  # (48, 256)
    wo_k = jnp.transpose(wo)                                            # (48, 48)
    w13 = jnp.concatenate([jnp.transpose(w1), jnp.transpose(w3)], axis=-1)  # (48, 256)
    w2_k = jnp.transpose(w2)                                            # (128, 48)
    anw_k, fnw_k = anw.reshape(1, DIM), fnw.reshape(1, DIM)

    # RoPE factors for the half-split layout at full [Q|K] width (96 lanes), rows = B*S
    cos16 = jnp.concatenate([cos, cos], axis=-1)            # (S, HEAD_DIM) = [cos | cos]
    sin16 = jnp.concatenate([-sin, sin], axis=-1)           # (S, HEAD_DIM) = [-sin | sin]
    cos96 = jnp.tile(cos16, (BATCH, 2 * N_HEADS))           # (BS, 2*DIM)
    sin96 = jnp.tile(sin16, (BATCH, 2 * N_HEADS))           # (BS, 2*DIM)

    # Head block-diag 0/1 masks (for block-diagonal K/V and segmented-softmax sums) and the
    # batch block-diag additive bias over the fused, head-major score columns.
    row_head = np.repeat(np.arange(N_HEADS), BS)                    # fused row    -> head
    col_head = np.repeat(np.arange(N_HEADS), HEAD_DIM)              # feature col  -> head
    kvmask = jnp.asarray((row_head[:, None] == col_head[None, :]).astype(np.float32))  # (48,48)
    segmask = jnp.asarray((row_head[:, None] == row_head[None, :]).astype(np.float32))  # (48,48)
    q_batch = np.arange(BS) // SEQ
    k_batch = np.tile(np.arange(BS) // SEQ, N_HEADS)
    bias48 = jnp.asarray(np.where(q_batch[:, None] == k_batch[None, :], 0.0, NEG_INF),
                         dtype=jnp.float32)                          # (BS, FUSED)

    out = encoder_block_pallas(x, anw_k, fnw_k, wqkv, wo_k, w13, w2_k,
                               cos96, sin96, bias48, kvmask, segmask)
    out = jax.block_until_ready(out)

    with jax.default_matmul_precision("float32"):
        ref = ref_encoder_block(x, wq, wk, wv, wo, w1, w2, w3, anw, fnw, cos, sin)
    np.testing.assert_allclose(np.asarray(out), np.asarray(ref), rtol=2e-3, atol=2e-3)

    print("KERNEL_OK")
</pallas_src>

<mosaic_0001>
module attributes {stable_mosaic.version = 11 : i64} {
  func.func @encoder_block_kernel(%arg0: memref<16x48xf32, #tpu.memory_space<vmem>>, %arg1: memref<1x48xf32, #tpu.memory_space<vmem>>, %arg2: memref<1x48xf32, #tpu.memory_space<vmem>>, %arg3: memref<48x256xf32, #tpu.memory_space<vmem>>, %arg4: memref<48x48xf32, #tpu.memory_space<vmem>>, %arg5: memref<48x256xf32, #tpu.memory_space<vmem>>, %arg6: memref<128x48xf32, #tpu.memory_space<vmem>>, %arg7: memref<16x96xf32, #tpu.memory_space<vmem>>, %arg8: memref<16x96xf32, #tpu.memory_space<vmem>>, %arg9: memref<16x48xf32, #tpu.memory_space<vmem>>, %arg10: memref<48x48xf32, #tpu.memory_space<vmem>>, %arg11: memref<48x48xf32, #tpu.memory_space<vmem>>, %arg12: memref<16x48xf32, #tpu.memory_space<vmem>>) attributes {dimension_semantics = [], scalar_prefetch = 0 : i64, scratch_operands = 0 : i64, tpu.core_type = #tpu.core_type<tc>} {
    %c0 = arith.constant 0 : index
    %c0_0 = arith.constant 0 : index
    %0 = vector.load %arg0[%c0, %c0_0] : memref<16x48xf32, #tpu.memory_space<vmem>>, vector<16x48xf32>
    %c0_1 = arith.constant 0 : index
    %c0_2 = arith.constant 0 : index
    %1 = vector.load %arg1[%c0_1, %c0_2] : memref<1x48xf32, #tpu.memory_space<vmem>>, vector<1x48xf32>
    %2 = arith.mulf %0, %0 : vector<16x48xf32>
    %cst = arith.constant dense<0.000000e+00> : vector<16xf32>
    %3 = vector.multi_reduction <add>, %2, %cst [1] : vector<16x48xf32> to vector<16xf32>
    %4 = vector.shape_cast %3 : vector<16xf32> to vector<16x1xf32>
    %cst_3 = arith.constant 4.800000e+01 : f32
    %5 = vector.broadcast %cst_3 : f32 to vector<16x1xf32>
    %6 = arith.divf %4, %5 : vector<16x1xf32>
    %cst_4 = arith.constant 9.99999974E-6 : f32
    %7 = vector.broadcast %cst_4 : f32 to vector<16x1xf32>
    %8 = arith.addf %6, %7 : vector<16x1xf32>
    %9 = math.rsqrt %8 : vector<16x1xf32>
    %10 = vector.broadcast %9 : vector<16x1xf32> to vector<16x48xf32>
    %11 = arith.mulf %0, %10 : vector<16x48xf32>
    %12 = vector.broadcast %1 : vector<1x48xf32> to vector<16x48xf32>
    %13 = arith.mulf %12, %11 : vector<16x48xf32>
    %c0_5 = arith.constant 0 : index
    %c0_6 = arith.constant 0 : index
    %14 = vector.load %arg3[%c0_5, %c0_6] : memref<48x256xf32, #tpu.memory_space<vmem>>, vector<48x256xf32>
    %cst_7 = arith.constant dense<0.000000e+00> : vector<16x256xf32>
    %15 = tpu.matmul %13, %14, %cst_7 {dimension_numbers = #tpu.dot_dimension_numbers<[1], [0], [0], [1], [0, 0, 1, 1], [], []>} : vector<16x48xf32>, vector<48x256xf32>, vector<16x256xf32> -> vector<16x256xf32>
    %16 = vector.extract_strided_slice %15 {offsets = [0, 0], sizes = [16, 96], strides = [1, 1]} : vector<16x256xf32> to vector<16x96xf32>
    %c0_8 = arith.constant 0 : index
    %c0_9 = arith.constant 0 : index
    %17 = vector.load %arg7[%c0_8, %c0_9] : memref<16x96xf32, #tpu.memory_space<vmem>>, vector<16x96xf32>
    %18 = arith.mulf %16, %17 : vector<16x96xf32>
    %19 = vector.extract_strided_slice %15 {offsets = [0, 96], sizes = [16, 96], strides = [1, 1]} : vector<16x256xf32> to vector<16x96xf32>
    %c0_10 = arith.constant 0 : index
    %c0_11 = arith.constant 0 : index
    %20 = vector.load %arg8[%c0_10, %c0_11] : memref<16x96xf32, #tpu.memory_space<vmem>>, vector<16x96xf32>
    %21 = arith.mulf %19, %20 : vector<16x96xf32>
    %22 = arith.addf %18, %21 : vector<16x96xf32>
    %23 = vector.extract_strided_slice %22 {offsets = [0, 0], sizes = [16, 48], strides = [1, 1]} : vector<16x96xf32> to vector<16x48xf32>
    %24 = vector.extract_strided_slice %22 {offsets = [0, 48], sizes = [16, 48], strides = [1, 1]} : vector<16x96xf32> to vector<16x48xf32>
    %25 = vector.extract_strided_slice %15 {offsets = [0, 192], sizes = [16, 48], strides = [1, 1]} : vector<16x256xf32> to vector<16x48xf32>
    %c0_12 = arith.constant 0 : index
    %c0_13 = arith.constant 0 : index
    %26 = vector.load %arg10[%c0_12, %c0_13] : memref<48x48xf32, #tpu.memory_space<vmem>>, vector<48x48xf32>
    %27 = tpu.concatenate %24, %24, %24 in 0 : vector<16x48xf32>, vector<16x48xf32>, vector<16x48xf32> -> vector<48x48xf32>
    %28 = arith.mulf %27, %26 : vector<48x48xf32>
    %cst_14 = arith.constant dense<0.000000e+00> : vector<16x48xf32>
    %29 = tpu.matmul %23, %28, %cst_14 {dimension_numbers = #tpu.dot_dimension_numbers<[1], [1], [0], [0], [0, 0, 1, 0], [], []>} : vector<16x48xf32>, vector<48x48xf32>, vector<16x48xf32> -> vector<16x48xf32>
    %cst_15 = arith.constant 2.500000e-01 : f32
    %30 = vector.broadcast %cst_15 : f32 to vector<16x48xf32>
    %31 = arith.mulf %29, %30 : vector<16x48xf32>
    %c0_16 = arith.constant 0 : index
    %c0_17 = arith.constant 0 : index
    %32 = vector.load %arg9[%c0_16, %c0_17] : memref<16x48xf32, #tpu.memory_space<vmem>>, vector<16x48xf32>
    %33 = arith.addf %31, %32 : vector<16x48xf32>
    %cst_18 = arith.constant dense<0xFF800000> : vector<16xf32>
    %34 = vector.multi_reduction <maximumf>, %33, %cst_18 [1] : vector<16x48xf32> to vector<16xf32>
    %35 = vector.shape_cast %34 : vector<16xf32> to vector<16x1xf32>
    %36 = vector.broadcast %35 : vector<16x1xf32> to vector<16x48xf32>
    %37 = arith.subf %33, %36 : vector<16x48xf32>
    %38 = math.exp %37 : vector<16x48xf32>
    %c0_19 = arith.constant 0 : index
    %c0_20 = arith.constant 0 : index
    %39 = vector.load %arg11[%c0_19, %c0_20] : memref<48x48xf32, #tpu.memory_space<vmem>>, vector<48x48xf32>
    %cst_21 = arith.constant dense<0.000000e+00> : vector<16x48xf32>
    %40 = tpu.matmul %38, %39, %cst_21 {dimension_numbers = #tpu.dot_dimension_numbers<[1], [0], [0], [1], [0, 0, 1, 1], [], []>} : vector<16x48xf32>, vector<48x48xf32>, vector<16x48xf32> -> vector<16x48xf32>
    %41 = tpu.reciprocal %40 {approx = true} : vector<16x48xf32> -> vector<16x48xf32>
    %42 = arith.mulf %38, %41 : vector<16x48xf32>
    %43 = tpu.concatenate %25, %25, %25 in 0 : vector<16x48xf32>, vector<16x48xf32>, vector<16x48xf32> -> vector<48x48xf32>
    %44 = arith.mulf %43, %26 : vector<48x48xf32>
    %cst_22 = arith.constant dense<0.000000e+00> : vector<16x48xf32>
    %45 = tpu.matmul %42, %44, %cst_22 {dimension_numbers = #tpu.dot_dimension_numbers<[1], [0], [0], [1], [0, 0, 1, 1], [], []>} : vector<16x48xf32>, vector<48x48xf32>, vector<16x48xf32> -> vector<16x48xf32>
    %c0_23 = arith.constant 0 : index
    %c0_24 = arith.constant 0 : index
    %46 = vector.load %arg4[%c0_23, %c0_24] : memref<48x48xf32, #tpu.memory_space<vmem>>, vector<48x48xf32>
    %cst_25 = arith.constant dense<0.000000e+00> : vector<16x48xf32>
    %47 = tpu.matmul %45, %46, %cst_25 {dimension_numbers = #tpu.dot_dimension_numbers<[1], [0], [0], [1], [0, 0, 1, 1], [], []>} : vector<16x48xf32>, vector<48x48xf32>, vector<16x48xf32> -> vector<16x48xf32>
    %48 = arith.addf %0, %47 : vector<16x48xf32>
    %c0_26 = arith.constant 0 : index
    %c0_27 = arith.constant 0 : index
    %49 = vector.load %arg2[%c0_26, %c0_27] : memref<1x48xf32, #tpu.memory_space<vmem>>, vector<1x48xf32>
    %50 = arith.mulf %48, %48 : vector<16x48xf32>
    %cst_28 = arith.constant dense<0.000000e+00> : vector<16xf32>
    %51 = vector.multi_reduction <add>, %50, %cst_28 [1] : vector<16x48xf32> to vector<16xf32>
    %52 = vector.shape_cast %51 : vector<16xf32> to vector<16x1xf32>
    %cst_29 = arith.constant 4.800000e+01 : f32
    %53 = vector.broadcast %cst_29 : f32 to vector<16x1xf32>
    %54 = arith.divf %52, %53 : vector<16x1xf32>
    %cst_30 = arith.constant 9.99999974E-6 : f32
    %55 = vector.broadcast %cst_30 : f32 to vector<16x1xf32>
    %56 = arith.addf %54, %55 : vector<16x1xf32>
    %57 = math.rsqrt %56 : vector<16x1xf32>
    %58 = vector.broadcast %57 : vector<16x1xf32> to vector<16x48xf32>
    %59 = arith.mulf %48, %58 : vector<16x48xf32>
    %60 = vector.broadcast %49 : vector<1x48xf32> to vector<16x48xf32>
    %61 = arith.mulf %60, %59 : vector<16x48xf32>
    %c0_31 = arith.constant 0 : index
    %c0_32 = arith.constant 0 : index
    %62 = vector.load %arg5[%c0_31, %c0_32] : memref<48x256xf32, #tpu.memory_space<vmem>>, vector<48x256xf32>
    %cst_33 = arith.constant dense<0.000000e+00> : vector<16x256xf32>
    %63 = tpu.matmul %61, %62, %cst_33 {dimension_numbers = #tpu.dot_dimension_numbers<[1], [0], [0], [1], [0, 0, 1, 1], [], []>} : vector<16x48xf32>, vector<48x256xf32>, vector<16x256xf32> -> vector<16x256xf32>
    %64 = vector.extract_strided_slice %63 {offsets = [0, 0], sizes = [16, 128], strides = [1, 1]} : vector<16x256xf32> to vector<16x128xf32>
    %65 = vector.extract_strided_slice %63 {offsets = [0, 128], sizes = [16, 128], strides = [1, 1]} : vector<16x256xf32> to vector<16x128xf32>
    %cst_34 = arith.constant 0.000000e+00 : f32
    %66 = vector.broadcast %cst_34 : f32 to vector<16x128xf32>
    %67 = arith.subf %66, %64 : vector<16x128xf32>
    %68 = math.exp %67 : vector<16x128xf32>
    %cst_35 = arith.constant 1.000000e+00 : f32
    %69 = vector.broadcast %cst_35 : f32 to vector<16x128xf32>
    %70 = arith.addf %69, %68 : vector<16x128xf32>
    %71 = tpu.reciprocal %70 {approx = true} : vector<16x128xf32> -> vector<16x128xf32>
    %72 = arith.mulf %64, %71 : vector<16x128xf32>
    %73 = arith.mulf %72, %65 : vector<16x128xf32>
    %c0_36 = arith.constant 0 : index
    %c0_37 = arith.constant 0 : index
    %74 = vector.load %arg6[%c0_36, %c0_37] : memref<128x48xf32, #tpu.memory_space<vmem>>, vector<128x48xf32>
    %cst_38 = arith.constant dense<0.000000e+00> : vector<16x48xf32>
    %75 = tpu.matmul %73, %74, %cst_38 {dimension_numbers = #tpu.dot_dimension_numbers<[1], [0], [0], [1], [0, 0, 1, 1], [], []>} : vector<16x128xf32>, vector<128x48xf32>, vector<16x48xf32> -> vector<16x48xf32>
    %76 = arith.addf %48, %75 : vector<16x48xf32>
    %c0_39 = arith.constant 0 : index
    %c0_40 = arith.constant 0 : index
    %77 = vector.load %arg12[%c0_39, %c0_40] : memref<16x48xf32, #tpu.memory_space<vmem>>, vector<16x48xf32>
    tpu.vector_store %arg12[%c0_39, %c0_40], %76 {strides = array<i32>} : memref<16x48xf32, #tpu.memory_space<vmem>>, vector<16x48xf32>,
    return
  }
}

</mosaic_0001>

<bundles_post_ra>
// kernel: encoder_block_pallas.1
= control target key start
LH: loop header
LB: loop body
LE: loop exit
PB: predicated region body
PF: predicated region fallthrough
CT: control target
= control target key end

     0   :  { %17 = vsyncpa [#allocation3], 0  ;;  %s1955_s0 = inlined_call_operand.hbm [shape: f32[16,48], index: 0, kind: input, shape index: {}]   ;;  %s1956_s1 = inlined_call_operand.vmem [shape: f32[1,48], index: 1, kind: input, shape index: {}]   ;;  %s1957_s2 = inlined_call_operand.vmem [shape: f32[1,48], index: 2, kind: input, shape index: {}]   ;;  %s1958_s3 = inlined_call_operand.vmem [shape: f32[48,256], index: 3, kind: input, shape index: {}]   ;;  %s1959_s4 = inlined_call_operand.hbm [shape: f32[48,48], index: 4, kind: input, shape index: {}]   ;;  %s1960_s5 = inlined_call_operand.vmem [shape: f32[48,256], index: 5, kind: input, shape index: {}]   ;;  %s1961_s6 = inlined_call_operand.vmem [shape: f32[128,48], index: 6, kind: input, shape index: {}]   ;;  %s1962_s7 = inlined_call_operand.hbm [shape: f32[16,96], index: 7, kind: input, shape index: {}]   ;;  %s1963_s8 = inlined_call_operand.vmem [shape: f32[16,96], index: 8, kind: input, shape index: {}]   ;;  %s1964_s9 = inlined_call_operand.hbm [shape: f32[16,48], index: 9, kind: input, shape index: {}]   ;;  %s1965_s10 = inlined_call_operand.hbm [shape: f32[48,48], index: 10, kind: input, shape index: {}]   ;;  %s1966_s11 = inlined_call_operand.hbm [shape: f32[48,48], index: 11, kind: input, shape index: {}]   ;;  %s1967_s12 = inlined_call_operand.hbm [shape: f32[16,48], index: 12, kind: output, shape index: {}]  }
   0x1   :  { %18 = vsyncpa [#allocation6], 0 }
   0x2   :  { %19 = vsyncpa [#allocation9], 0 }
   0x3   :  { %20 = vsyncpa [#allocation12], 0 }
   0x4   :  { %21 = vsyncpa [#allocation4], 0  ;;  %s1516_s21 = smov [#allocation5]   ;;  %s1517_s23 = smov [#allocation8]  }
   0x5   :  { %s45_s22 = sshll.u32 %s1516_s21, 4  ;;  %s75_s24 = sshll.u32 %s1517_s23, 4  ;;  %s46_s22 = int_to_ptr.vmem [resolvable:$true] %s45_s22  ;;  %s1596_s24 = int_to_ptr.vmem [resolvable:$true] %s75_s24 }
   0x6   :  { %s1352_s27 = scalar_lea.hbm %s1959_s4, 768 }
   0x7   :  { %p1353_p0 = scmp.ne.s32.totalorder %s1959_s4, %s1352_s27  ;;  %p1356_p1 = scmp.lt.u32.totalorder %s1352_s27, %s1959_s4 }
   0x9   :  { %p1358_p2 = pnand %p1356_p1, %p1353_p0 }
   0xb   :  { %1361 = shalt.err (!%p1358_p2)
}
   0xc   :  { %s1362_s14 = scalar_lea.vmem %s46_s22, 768  ;;  %p1367_p4 = scmp.lt.s32.totalorder %s46_s22, %s46_s22 }
   0xd   :  { %p1363_p3 = scmp.ne.s32.totalorder %s46_s22, %s1362_s14  ;;  %p1368_p5 = scmp.lt.s32.totalorder %s1362_s14, %s1362_s14 }
   0xf   :  { %p1369_p6 = por %p1368_p5, %p1367_p4 }
  0x11   :  { %p1370_p7 = pnand %p1369_p6, %p1363_p3 }
  0x13   :  { %1373 = shalt.err (!%p1370_p7)
}
  0x14   :  { %s1518_s15 = smov 128   ;;  %s1519_s16 = smov 8  }
  0x15   :  { %51 = dma.hbm_to_vmem [thread:$0]  %s1959_s4, 768, %s46_s22, [#allocation6], %s1518_s15, %s1518_s15, %s1519_s16  }
  0x16   :  { %s1374_s21 = scalar_lea.hbm %s1964_s9, 256 }
  0x17   :  { %p1375_p8 = scmp.ne.s32.totalorder %s1964_s9, %s1374_s21  ;;  %p1378_p9 = scmp.lt.u32.totalorder %s1374_s21, %s1964_s9 }
  0x19   :  { %p1380_p10 = pnand %p1378_p9, %p1375_p8 }
  0x1b   :  { %1383 = shalt.err (!%p1380_p10)
}
  0x1c   :  { %s1384_s28 = scalar_lea.vmem %s1596_s24, 256  ;;  %p1389_p12 = scmp.lt.s32.totalorder %s1596_s24, %s1596_s24 }
  0x1d   :  { %p1385_p11 = scmp.ne.s32.totalorder %s1596_s24, %s1384_s28  ;;  %p1390_p13 = scmp.lt.s32.totalorder %s1384_s28, %s1384_s28 }
  0x1f   :  { %p1391_p0 = por %p1390_p13, %p1389_p12 }
  0x21   :  { %p1392_p1 = pnand %p1391_p0, %p1385_p11 }
  0x23   :  { %1395 = shalt.err (!%p1392_p1)
}
  0x24   :  { %81 = dma.hbm_to_vmem [thread:$0]  %s1964_s9, 256, %s1596_s24, [#allocation9], %s1518_s15, %s1518_s15, %s1519_s16  }
  0x25   :  { %s1520_s29 = smov [#allocation2]   ;;  %s1521_s13 = smov [#allocation7]  }
  0x26   :  { %s27_s30 = sshll.u32 %s1520_s29, 4  ;;  %s61_s14 = sshll.u32 %s1521_s13, 4  ;;  %s28_s30 = int_to_ptr.vmem [resolvable:$true] %s27_s30  ;;  %s1633_s14 = int_to_ptr.vmem [resolvable:$true] %s61_s14 }
  0x27   :  { %s1396_s19 = scalar_lea.hbm %s1955_s0, 256 }
  0x28   :  { %p1397_p2 = scmp.ne.s32.totalorder %s1955_s0, %s1396_s19  ;;  %p1400_p3 = scmp.lt.u32.totalorder %s1396_s19, %s1955_s0 }
  0x2a   :  { %p1402_p4 = pnand %p1400_p3, %p1397_p2 }
  0x2c   :  { %1405 = shalt.err (!%p1402_p4)
}
  0x2d   :  { %s1406_s9 = scalar_lea.vmem %s28_s30, 256  ;;  %p1411_p6 = scmp.lt.s32.totalorder %s28_s30, %s28_s30 }
  0x2e   :  { %p1407_p5 = scmp.ne.s32.totalorder %s28_s30, %s1406_s9  ;;  %p1412_p7 = scmp.lt.s32.totalorder %s1406_s9, %s1406_s9 }
  0x30   :  { %p1413_p8 = por %p1412_p7, %p1411_p6 }
  0x32   :  { %p1414_p9 = pnand %p1413_p8, %p1407_p5 }
  0x34   :  { %1417 = shalt.err (!%p1414_p9)
}
  0x35   :  { %33 = dma.hbm_to_vmem [thread:$0]  %s1955_s0, 256, %s28_s30, [#allocation3], %s1518_s15, %s1518_s15, %s1519_s16  }
  0x36   :  { %s1418_s4 = scalar_lea.hbm %s1962_s7, 256 }
  0x37   :  { %p1419_p10 = scmp.ne.s32.totalorder %s1962_s7, %s1418_s4  ;;  %p1422_p11 = scmp.lt.u32.totalorder %s1418_s4, %s1962_s7 }
  0x39   :  { %p1424_p12 = pnand %p1422_p11, %p1419_p10 }
  0x3b   :  { %1427 = shalt.err (!%p1424_p12)
}
  0x3c   :  { %s1428_s18 = scalar_lea.vmem %s1633_s14, 256  ;;  %p1433_p0 = scmp.lt.s32.totalorder %s1633_s14, %s1633_s14 }
  0x3d   :  { %p1429_p13 = scmp.ne.s32.totalorder %s1633_s14, %s1428_s18  ;;  %p1434_p1 = scmp.lt.s32.totalorder %s1428_s18, %s1428_s18 }
  0x3f   :  { %p1435_p2 = por %p1434_p1, %p1433_p0 }
  0x41   :  { %p1436_p3 = pnand %p1435_p2, %p1429_p13 }
  0x43   :  { %1439 = shalt.err (!%p1436_p3)
}
  0x44   :  { %67 = dma.hbm_to_vmem [thread:$0]  %s1962_s7, 256, %s1633_s14, [#allocation6], %s1518_s15, %s1518_s15, %s1519_s16  }
  0x45   :  { %s1522_s19 = smov [#allocation10]   ;;  %s1523_s21 = smov [#allocation11]  }
  0x46   :  { %s87_s20 = sshll.u32 %s1522_s19, 4  ;;  %s99_s23 = sshll.u32 %s1523_s21, 4  ;;  %s88_s20 = int_to_ptr.vmem [resolvable:$true] %s87_s20  ;;  %s1670_s23 = int_to_ptr.vmem [resolvable:$true] %s99_s23 }
  0x47   :  { %s1440_s24 = scalar_lea.hbm %s1965_s10, 768 }
  0x48   :  { %p1441_p4 = scmp.ne.s32.totalorder %s1965_s10, %s1440_s24  ;;  %p1444_p5 = scmp.lt.u32.totalorder %s1440_s24, %s1965_s10 }
  0x4a   :  { %p1446_p6 = pnand %p1444_p5, %p1441_p4 }
  0x4c   :  { %1449 = shalt.err (!%p1446_p6)
}
  0x4d   :  { %s1450_s7 = scalar_lea.vmem %s88_s20, 768  ;;  %p1455_p8 = scmp.lt.s32.totalorder %s88_s20, %s88_s20 }
  0x4e   :  { %p1451_p7 = scmp.ne.s32.totalorder %s88_s20, %s1450_s7  ;;  %p1456_p9 = scmp.lt.s32.totalorder %s1450_s7, %s1450_s7 }
  0x50   :  { %p1457_p10 = por %p1456_p9, %p1455_p8 }
  0x52   :  { %p1458_p11 = pnand %p1457_p10, %p1451_p7 }
  0x54   :  { %1461 = shalt.err (!%p1458_p11)
}
  0x55   :  { %93 = dma.hbm_to_vmem [thread:$0]  %s1965_s10, 768, %s88_s20, [#allocation9], %s1518_s15, %s1518_s15, %s1519_s16  }
  0x56   :  { %s1462_s17 = scalar_lea.hbm %s1966_s11, 768 }
  0x57   :  { %p1463_p12 = scmp.ne.s32.totalorder %s1966_s11, %s1462_s17  ;;  %p1466_p13 = scmp.lt.u32.totalorder %s1462_s17, %s1966_s11 }
  0x59   :  { %p1468_p0 = pnand %p1466_p13, %p1463_p12 }
  0x5b   :  { %1471 = shalt.err (!%p1468_p0)
}
  0x5c   :  { %s1472_s21 = scalar_lea.vmem %s1670_s23, 768  ;;  %p1477_p2 = scmp.lt.s32.totalorder %s1670_s23, %s1670_s23 }
  0x5d   :  { %p1473_p1 = scmp.ne.s32.totalorder %s1670_s23, %s1472_s21  ;;  %p1478_p3 = scmp.lt.s32.totalorder %s1472_s21, %s1472_s21 }
  0x5f   :  { %p1479_p4 = por %p1478_p3, %p1477_p2 }
  0x61   :  { %p1480_p5 = pnand %p1479_p4, %p1473_p1 }
  0x63   :  { %1483 = shalt.err (!%p1480_p5)
}
  0x64   :  { %105 = dma.hbm_to_vmem [thread:$0]  %s1966_s11, 768, %s1670_s23, [#allocation12], %s1518_s15, %s1518_s15, %s1519_s16  }
  0x65   :  { %1506 = dma.done.wait [#allocation3], 256  }
  0x66   :  { %1507 = vsyncadd [#allocation3], 4294967040 }
  0x67   :  { %1508 = dma.done.wait [#allocation6], 1024  }
  0x68   :  { %1509 = vsyncadd [#allocation6], 4294966272 }
  0x69   :  { %1510 = dma.done.wait [#allocation9], 1024  }
  0x6a   :  { %1511 = vsyncadd [#allocation9], 4294966272 }
  0x6b   :  { %1512 = dma.done.wait [#allocation12], 768  }
  0x6c   :  { %1513 = vsyncadd [#allocation12], 4294966528  ;;  %v1707_v0 = vld [vmem:[#allocation2] sm:$0xff]  ;;  %vm129_vm0 = vcmask 392192   ;;  %v1709_v1 = vld [vmem:[#allocation2 + $0x8] sm:$0xff]  ;;  %v1524_v19 = vmov 0.0  }
  0x6d   :  { %v127_v2 = vmul.f32 %v1707_v0, %v1707_v0  ;;  %v128_v3 = vmul.f32 %v1709_v1, %v1709_v1  ;;  %v154_v6 = vld [vmem:[%s1958_s3 + $0x8] sm:$0xff]  ;;  %v156_v7 = vld [vmem:[%s1958_s3 + $0x18] sm:$0xff]  ;;  %v153_v9 = vld [vmem:[%s1958_s3] sm:$0xff]  ;;  %235 = vmatprep.mubr.f32.mxu0 %v1524_v19  ;;  %s1525_s24 = smov 96   ;;  %s1526_s28 = smov 48   ;;  %vm278_vm1 = vcmask 261120  }
  0x6e   :  { %v1173_v8 = vpack.c.bf16 %v156_v7, %v154_v6  ;;  %v155_v10 = vld [vmem:[%s1958_s3 + $0x10] sm:$0xff]  ;;  %v158_v12 = vld [vmem:[%s1958_s3 + $0x28] sm:$0xff]  ;;  %v160_v13 = vld [vmem:[%s1958_s3 + $0x38] sm:$0xff]  ;;  %s1529_s7 = smov 64  }
  0x6f   :  { %v130_v4 = vsel %vm129_vm0, %v127_v2, 0.0  ;;  %v133_v5 = vsel %vm129_vm0, %v128_v3, 0.0  ;;  %v1175_v11 = vpack.c.bf16 %v155_v10, %v153_v9  ;;  %v157_v14 = vld [vmem:[%s1958_s3 + $0x20] sm:$0xff]  ;;  %v1177_v15 = vpack.c.bf16 %v160_v13, %v158_v12  ;;  %v159_v16 = vld [vmem:[%s1958_s3 + $0x30] sm:$0xff]  ;;  %v162_v17 = vld [vmem:[%s1958_s3 + $0x48] sm:$0xff] }
  0x70   :  { %131 = vadd.xlane.f32.xlu0 %v130_v4  ;;  %1174 = vmatprep.subr.bf16.mxu0 %v1173_v8  ;;  %v164_v18 = vld [vmem:[%s1958_s3 + $0x58] sm:$0xff]  ;;  %v1179_v20 = vpack.c.bf16 %v159_v16, %v157_v14  ;;  %v161_v22 = vld [vmem:[%s1958_s3 + $0x40] sm:$0xff]  ;;  %v163_v23 = vld [vmem:[%s1958_s3 + $0x50] sm:$0xff] }
  0x71   :  { %1176 = vmatpush1.bf16.msra.mxu0 %v1175_v11  ;;  %v1181_v21 = vpack.c.bf16 %v164_v18, %v162_v17  ;;  %v1183_v24 = vpack.c.bf16 %v163_v23, %v161_v22  ;;  %v252_v25 = vld [vmem:[%s1963_s8] sm:$0xff]  ;;  %v253_v26 = vld [vmem:[%s1963_s8 + $0x8] sm:$0xff]  ;;  %v1775_v48 = vld [vmem:[#allocation10 + $0x18] sm:$0xff]  ;;  %s1528_s8 = smov 80  }
  0x72   :  { %1178 = vmatprep.subr.bf16.mxu0 %v1177_v15  ;;  %256 = vrot.lane.b32.xlu1 %v252_v25, %s1525_s24  ;;  %v1760_v27 = vld [vmem:[#allocation10] sm:$0xff]  ;;  %v1781_v51 = vld [vmem:[#allocation10 + $0x28] sm:$0xff]  ;;  %v1790_v54 = vld [vmem:[#allocation10 + $0x10] sm:$0xff] }
  0x73   :  { %v1008_v35 = vld [vmem:[%s1956_s1] ss:$0 sm:$0xff]  ;;  %s1527_s1 = smov 32   ;;  %v1786_v53 = vld [vmem:[#allocation10 + $0x8] sm:$0xff]  ;;  %vm1186_vm2 = vmpackc.low %vm129_vm0, %vm129_vm0 }
  0x74   :  { %134 = vadd.xlane.f32.xlu0 %v133_v5  ;;  %v1794_v55 = vld [vmem:[#allocation10 + $0x20] sm:$0xff]  ;;  %v249_v2 = vld [vmem:[#allocation7 + $0x8] sm:$0xff] }
  0x75   :  { %1180 = vmatpush1.bf16.msra.mxu0 %v1179_v20  ;;  %v248_v57 = vld [vmem:[#allocation7] sm:$0xff] }
  0x76   :  { %1182 = vmatprep.subr.bf16.mxu0 %v1181_v21  ;;  %258 = vrot.lane.b32.xlu1 %v253_v26, %s1525_s24 }
  0x79   :  { %1184 = vmatpush1.bf16.msra.mxu0 %v1183_v24 }
  0x7a   :  { %297 = vrot.lane.b32.xlu1 %v1760_v27, %s1526_s28 }
  0xe4   :  { %v257_v41 = vpop.permute.xlu1 %256 }
  0xe8   :  { %v259_v46 = vpop.permute.xlu1 %258 }
  0xec   :  { %v298_v56 = vpop.permute.xlu1 %297 }
  0xfd   :  { %v132_v28 = vpop.xlane.xlu0 %131 }
  0xfe   :  { %v137_v29 = vmul.f32 0.020833334, %v132_v28 }
 0x100   :  { %v139_v30 = vadd.f32 1e-05, %v137_v29 }
 0x101   :  { %v135_v31 = vpop.xlane.xlu0 %134 }
 0x102   :  { %1328 = vrsqrt.f32 %v139_v30  ;;  %v138_v32 = vmul.f32 0.020833334, %v135_v31 }
 0x104   :  { %v140_v33 = vadd.f32 1e-05, %v138_v32 }
 0x106   :  { %1330 = vrsqrt.f32 %v140_v33 }
 0x10c   :  { %v1329_v34 = vpop.eup %1328 }
 0x10d   :  { %v143_v36 = vmul.f32 %v1329_v34, %v1707_v0 }
 0x10f   :  { %v151_v37 = vmul.f32 %v1008_v35, %v143_v36  ;;  %v435_v36 = vld [vmem:[#allocation8 + $0x8] sm:$0xff] }
 0x110   :  { %v1331_v38 = vpop.eup %1330 }
 0x111   :  { %1009 = vmatmul.mubr.msk.f32.vlgmr.msra.gmra.mrb[0].mxu0 %vm129_vm0, %v151_v37  ;;  %v144_v39 = vmul.f32 %v1331_v38, %v1709_v1 }
 0x112   :  { %241 = vmatprep.mubr.f32.mxu0 %v1524_v19 }
 0x113   :  { %v152_v40 = vmul.f32 %v1008_v35, %v144_v39  ;;  %v434_v39 = vld [vmem:[#allocation8] sm:$0xff] }
 0x115   :  { %1010 = vmatmul.mubr.msk.f32.gmra.mrb[2].mxu0 %vm129_vm0, %v152_v40 }
 0x1e4   :  { %v237_v42 = vpop.f32.mrb[0].mxu0 }
 0x1e5   :  { %v262_v43 = vmul.f32 %v257_v41, %v237_v42  ;;  %v1772_v44 = vpop.f32.mrb[1].mxu0  ;;  %v250_v59 = vmul.f32 %v248_v57, %v237_v42 }
 0x1e6   :  { %v263_v45 = vmul.f32 %v257_v41, %v1772_v44 }
 0x1e7   :  { %270 = vrot.lane.b32.xlu0 %v262_v43, %s1527_s1 }
 0x1e8   :  { %272 = vrot.lane.b32.xlu1 %v263_v45, %s1527_s1  ;;  %v243_v47 = vpop.f32.mrb[2].mxu0 }
 0x1e9   :  { %v264_v49 = vmul.f32 %v259_v46, %v243_v47  ;;  %v1777_v50 = vpop.f32.mrb[3].mxu0  ;;  %v251_v3 = vmul.f32 %v249_v2, %v243_v47  ;;  %v451_v47 = vld [vmem:[#allocation11 + $0x8] sm:$0xff] }
 0x1ea   :  { %v265_v52 = vmul.f32 %v259_v46, %v1777_v50  ;;  %v450_v46 = vld [vmem:[#allocation11] sm:$0xff] }
 0x1eb   :  { %303 = vrot.lane.b32.xlu0 %v1775_v48, %s1526_s28 }
 0x1ec   :  { %274 = vrot.lane.b32.xlu1 %v264_v49, %s1527_s1  ;;  %v1203_v49 = vpack.c.bf16 %v451_v47, %v450_v46 }
 0x1ee   :  { %1204 = vmatprep.subr.bf16.mxu0 %v1203_v49 }
 0x1ef   :  { %307 = vrot.lane.b32.xlu0 %v1781_v51, %s1526_s28  ;;  %1206 = vmatpush3.bf16.msra.mxu0 %v1203_v49 }
 0x1f0   :  { %276 = vrot.lane.b32.xlu1 %v265_v52, %s1527_s1  ;;  %v452_v52 = vld [vmem:[#allocation11 + $0x10] sm:$0xff] }
 0x1f4   :  { %299 = vrot.lane.b32.xlu1 %v1786_v53, %s1526_s28 }
 0x1f8   :  { %301 = vrot.lane.b32.xlu1 %v1790_v54, %s1526_s28 }
 0x1fc   :  { %305 = vrot.lane.b32.xlu1 %v1794_v55, %s1526_s28 }
 0x259   :  { %v271_v58 = vpop.permute.xlu0 %270 }
 0x25a   :  { %v273_v60 = vpop.permute.xlu1 %272 }
 0x25b   :  { %v279_v61 = vsel %vm278_vm1, %v271_v58, %v273_v60  ;;  %v454_v58 = vld [vmem:[#allocation11 + $0x20] sm:$0xff] }
 0x25c   :  { %v283_v62 = vadd.f32 %v279_v61, %v250_v59  ;;  %v455_v59 = vld [vmem:[#allocation11 + $0x28] sm:$0xff] }
 0x25d   :  { %v304_v7 = vpop.permute.xlu0 %303 }
 0x25e   :  { %v275_v63 = vpop.permute.xlu1 %274  ;;  %1090 = vmatprep.mubr.msk.f32.mxu1 %vm129_vm0, %v283_v62  ;;  %v315_v9 = vmul.f32 %v298_v56, %v283_v62  ;;  %v453_v56 = vld [vmem:[#allocation11 + $0x18] sm:$0xff] }
 0x25f   :  { %v1207_v57 = vpack.c.bf16 %v453_v56, %v452_v52 }
 0x261   :  { %v308_v15 = vpop.permute.xlu0 %307  ;;  %1208 = vmatprep.subr.bf16.mxu0 %v1207_v57 }
 0x262   :  { %v277_v4 = vpop.permute.xlu1 %276  ;;  %1210 = vmatpush3.bf16.msra.mxu0 %v1207_v57 }
 0x263   :  { %v280_v5 = vsel %vm278_vm1, %v275_v63, %v277_v4 }
 0x264   :  { %v284_v6 = vadd.f32 %v280_v5, %v251_v3 }
 0x266   :  { %v300_v8 = vpop.permute.xlu1 %299  ;;  %v318_v14 = vmul.f32 %v304_v7, %v284_v6  ;;  %v320_v18 = vmul.f32 %v308_v15, %v284_v6 }
 0x267   :  { %v316_v10 = vmul.f32 %v300_v8, %v284_v6 }
 0x269   :  { %v1298_v11 = vpack.i.bf16 %v316_v10, %v315_v9 }
 0x26a   :  { %v302_v12 = vpop.permute.xlu1 %301 }
 0x26b   :  { %v317_v13 = vmul.f32 %v302_v12, %v283_v62  ;;  %1299 = vrot.lane.b32.xlu1 %v1298_v11, %s1528_s8 }
 0x26d   :  { %v1303_v16 = vpack.i.bf16 %v318_v14, %v317_v13 }
 0x26e   :  { %v306_v17 = vpop.permute.xlu1 %305 }
 0x26f   :  { %v319_v20 = vmul.f32 %v306_v17, %v283_v62  ;;  %1304 = vrot.lane.b32.xlu0 %v1303_v16, %s1528_s8 }
 0x271   :  { %v1308_v21 = vpack.i.bf16 %v320_v18, %v319_v20 }
 0x273   :  { %1309 = vrot.lane.b32.xlu1 %v1308_v21, %s1528_s8 }
 0x2dd   :  { %v1300_v22 = vpop.permute.xlu1 %1299 }
 0x2de   :  { %v1302_v23 = vunpack.i.h.bf16 %v1300_v22  ;;  %v1301_v24 = vunpack.i.l.bf16 %v1300_v22 }
 0x2e0   :  { %v1185_v25 = vpack.c.bf16 %v1302_v23, %v1301_v24  ;;  %v670_v24 = vld [vmem:[#allocation5] sm:$0xff] }
 0x2e1   :  { %v1305_v26 = vpop.permute.xlu0 %1304 }
 0x2e2   :  { %v1307_v28 = vunpack.i.h.bf16 %v1305_v26  ;;  %v1306_v29 = vunpack.i.l.bf16 %v1305_v26  ;;  %1187 = vmatprep.subr.msk.bf16.mxu1 %vm1186_vm2, %v1185_v25 }
 0x2e3   :  { %1190 = vmatpush3.bf16.xpose.msk.msra.mxu1 %vm1186_vm2, %v1185_v25  ;;  %v671_v25 = vld [vmem:[#allocation5 + $0x8] sm:$0xff] }
 0x2e4   :  { %v1191_v30 = vpack.c.bf16 %v1307_v28, %v1306_v29 }
 0x2e5   :  { %v1310_v31 = vpop.permute.xlu1 %1309 }
 0x2e6   :  { %v1312_v32 = vunpack.i.h.bf16 %v1310_v31  ;;  %v1311_v33 = vunpack.i.l.bf16 %v1310_v31  ;;  %1193 = vmatprep.subr.msk.bf16.mxu1 %vm1186_vm2, %v1191_v30 }
 0x2e8   :  { %v1197_v34 = vpack.c.bf16 %v1312_v32, %v1311_v33 }
 0x2eb   :  { %1196 = vmatpush3.bf16.xpose.msk.msra.mxu1 %vm1186_vm2, %v1191_v30  ;;  %v1227_v30 = vpack.c.bf16 %v671_v25, %v670_v24  ;;  %v897_v25 = vld [vmem:[%s1961_s6 + $0x20] sm:$0xff] }
 0x2ec   :  { %1199 = vmatprep.subr.msk.bf16.mxu1 %vm1186_vm2, %v1197_v34 }
 0x2f3   :  { %1202 = vmatpush3.bf16.xpose.msk.msra.mxu1 %vm1186_vm2, %v1197_v34  ;;  %v672_v34 = vld [vmem:[#allocation5 + $0x10] sm:$0xff] }
 0x2fa   :  { %1091 = vmatmul.mubr.msk.f32.vlgmr.msra.gmra.mrb[0].mxu1 %vm129_vm0, %v284_v6 }
 0x3cd   :  { %v1092_v35 = vpop.f32.mrb[0].mxu1 }
 0x3ce   :  { %v433_v37 = vmul.f32 0.25, %v1092_v35  ;;  %v423_v38 = vpop.f32.mrb[1].mxu1  ;;  %v673_v35 = vld [vmem:[#allocation5 + $0x18] sm:$0xff] }
 0x3cf   :  { %v432_v40 = vmul.f32 0.25, %v423_v38 }
 0x3d0   :  { %v437_v41 = vadd.f32 %v435_v36, %v433_v37 }
 0x3d1   :  { %v436_v42 = vadd.f32 %v434_v39, %v432_v40  ;;  %v1231_v39 = vpack.c.bf16 %v673_v35, %v672_v34  ;;  %v674_v40 = vld [vmem:[#allocation5 + $0x20] sm:$0xff] }
 0x3d2   :  { %v441_v43 = vsel %vm129_vm0, %v437_v41, -inf  ;;  %v903_v35 = vld [vmem:[%s1961_s6 + $0x50] sm:$0xff] }
 0x3d3   :  { %442 = vmax.xlane.f32.xlu1 %v441_v43  ;;  %v438_v45 = vsel %vm129_vm0, %v436_v42, -inf }
 0x3d4   :  { %439 = vmax.xlane.f32.xlu0 %v438_v45 }
 0x3e4   :  { %543 = vrot.lane.b32.xlu1 %v1786_v53, %s1529_s7  ;;  %v1211_v53 = vpack.c.bf16 %v455_v59, %v454_v58 }
 0x3e6   :  { %1212 = vmatprep.subr.bf16.mxu0 %v1211_v53 }
 0x3e7   :  { %1214 = vmatpush3.bf16.msra.mxu0 %v1211_v53 }
 0x3e8   :  { %547 = vrot.lane.b32.xlu1 %v1775_v48, %s1529_s7 }
 0x3ea   :  { %541 = vrot.lane.b32.xlu0 %v1760_v27, %s1529_s7 }
 0x3ec   :  { %551 = vrot.lane.b32.xlu1 %v1781_v51, %s1529_s7 }
 0x3ee   :  { %545 = vrot.lane.b32.xlu0 %v1790_v54, %s1529_s7 }
 0x3f2   :  { %549 = vrot.lane.b32.xlu0 %v1794_v55, %s1529_s7 }
 0x460   :  { %v443_v48 = vpop.xlane.xlu1 %442 }
 0x461   :  { %v445_v60 = vsub.f32 %v437_v41, %v443_v48  ;;  %v440_v61 = vpop.xlane.xlu0 %439  ;;  %v675_v41 = vld [vmem:[#allocation5 + $0x28] sm:$0xff]  ;;  %v784_v48 = vld [vmem:[%s1960_s5] sm:$0xff] }
 0x462   :  { %v444_v27 = vsub.f32 %v436_v42, %v440_v61  ;;  %v1235_v42 = vpack.c.bf16 %v675_v41, %v674_v40  ;;  %v907_v41 = vld [vmem:[%s1961_s6 + $0x70] sm:$0xff] }
 0x463   :  { %v448_v62 = vmul.f32 1.442695, %v445_v60  ;;  %v786_v60 = vld [vmem:[%s1960_s5 + $0x10] sm:$0xff] }
 0x464   :  { %v446_v63 = vmul.f32 1.442695, %v444_v27  ;;  %v544_v2 = vpop.permute.xlu1 %543  ;;  %v1241_v61 = vpack.c.bf16 %v786_v60, %v784_v48  ;;  %v789_v27 = vld [vmem:[%s1960_s5 + $0x28] sm:$0xff] }
 0x465   :  { %v560_v3 = vmul.f32 %v544_v2, %v1777_v50  ;;  %v542_v4 = vpop.permute.xlu0 %541  ;;  %v788_v2 = vld [vmem:[%s1960_s5 + $0x20] sm:$0xff] }
 0x466   :  { %1332 = vpow2.f32 %v446_v63  ;;  %v559_v51 = vmul.f32 %v542_v4, %v1772_v44 }
 0x467   :  { %1334 = vpow2.f32 %v448_v62  ;;  %v791_v62 = vld [vmem:[%s1960_s5 + $0x38] sm:$0xff] }
 0x468   :  { %v1313_v54 = vpack.i.bf16 %v560_v3, %v559_v51  ;;  %v548_v5 = vpop.permute.xlu1 %547  ;;  %v1243_v63 = vpack.c.bf16 %v791_v62, %v789_v27  ;;  %v790_v3 = vld [vmem:[%s1960_s5 + $0x30] sm:$0xff]  ;;  %v793_v51 = vld [vmem:[%s1960_s5 + $0x48] sm:$0xff] }
 0x469   :  { %v562_v6 = vmul.f32 %v548_v5, %v1777_v50  ;;  %v546_v7 = vpop.permute.xlu0 %545  ;;  %v1245_v4 = vpack.c.bf16 %v790_v3, %v788_v2 }
 0x46a   :  { %v561_v55 = vmul.f32 %v546_v7, %v1772_v44  ;;  %1314 = vrot.lane.b32.xlu0 %v1313_v54, %s1529_s7  ;;  %v795_v54 = vld [vmem:[%s1960_s5 + $0x58] sm:$0xff]  ;;  %v794_v7 = vld [vmem:[%s1960_s5 + $0x50] sm:$0xff] }
 0x46b   :  { %v1247_v5 = vpack.c.bf16 %v795_v54, %v793_v51 }
 0x46c   :  { %v1318_v8 = vpack.i.bf16 %v562_v6, %v561_v55  ;;  %v552_v9 = vpop.permute.xlu1 %551  ;;  %v792_v6 = vld [vmem:[%s1960_s5 + $0x40] sm:$0xff] }
 0x46d   :  { %v564_v10 = vmul.f32 %v552_v9, %v1777_v50  ;;  %v550_v11 = vpop.permute.xlu0 %549  ;;  %v1249_v55 = vpack.c.bf16 %v794_v7, %v792_v6 }
 0x46e   :  { %v563_v12 = vmul.f32 %v550_v11, %v1772_v44  ;;  %1319 = vrot.lane.b32.xlu1 %v1318_v8, %s1529_s7 }
 0x470   :  { %v1333_v13 = vpop.eup %1332  ;;  %v1323_v14 = vpack.i.bf16 %v564_v10, %v563_v12 }
 0x471   :  { %v1335_v15 = vpop.eup %1334  ;;  %1105 = vmatprep.mubr.msk.f32.mxu0 %vm129_vm0, %v1333_v13 }
 0x472   :  { %1106 = vmatmul.mubr.msk.f32.vlgmr.msra.gmra.mrb[4].mxu0 %vm129_vm0, %v1335_v15  ;;  %1324 = vrot.lane.b32.xlu0 %v1323_v14, %s1529_s7 }
 0x4dc   :  { %v1315_v16 = vpop.permute.xlu0 %1314 }
 0x4dd   :  { %v1317_v17 = vunpack.i.h.bf16 %v1315_v16  ;;  %v1316_v18 = vunpack.i.l.bf16 %v1315_v16  ;;  %v1025_v16 = vld [vmem:[%s1957_s2] ss:$0 sm:$0xff] }
 0x4df   :  { %v1215_v20 = vpack.c.bf16 %v1317_v17, %v1316_v18 }
 0x4e0   :  { %v1320_v21 = vpop.permute.xlu1 %1319 }
 0x4e1   :  { %v1322_v50 = vunpack.i.h.bf16 %v1320_v21  ;;  %v1321_v22 = vunpack.i.l.bf16 %v1320_v21  ;;  %1216 = vmatprep.subr.bf16.mxu0 %v1215_v20 }
 0x4e2   :  { %1218 = vmatpush3.bf16.msra.mxu0 %v1215_v20 }
 0x4e3   :  { %v1219_v44 = vpack.c.bf16 %v1322_v50, %v1321_v22  ;;  %v893_v50 = vld [vmem:[%s1961_s6] sm:$0xff]  ;;  %v894_v22 = vld [vmem:[%s1961_s6 + $0x8] sm:$0xff] }
 0x4e4   :  { %v1325_v23 = vpop.permute.xlu0 %1324 }
 0x4e5   :  { %v1327_v26 = vunpack.i.h.bf16 %v1325_v23  ;;  %v1326_v28 = vunpack.i.l.bf16 %v1325_v23  ;;  %1220 = vmatprep.subr.bf16.mxu0 %v1219_v44  ;;  %v895_v23 = vld [vmem:[%s1961_s6 + $0x10] sm:$0xff] }
 0x4e6   :  { %1222 = vmatpush3.bf16.msra.mxu0 %v1219_v44  ;;  %v1251_v44 = vpack.c.bf16 %v894_v22, %v893_v50 }
 0x4e7   :  { %v1223_v29 = vpack.c.bf16 %v1327_v26, %v1326_v28  ;;  %v898_v26 = vld [vmem:[%s1961_s6 + $0x28] sm:$0xff] }
 0x4e8   :  { %1252 = vmatprep.subr.bf16.mxu1 %v1251_v44  ;;  %v1259_v28 = vpack.c.bf16 %v898_v26, %v897_v25 }
 0x4e9   :  { %1224 = vmatprep.subr.bf16.mxu0 %v1223_v29  ;;  %1254 = vmatpush3.bf16.msra.mxu1 %v1251_v44 }
 0x4ea   :  { %1226 = vmatpush3.bf16.msra.mxu0 %v1223_v29  ;;  %v899_v29 = vld [vmem:[%s1961_s6 + $0x30] sm:$0xff] }
 0x4eb   :  { %1228 = vmatprep.subr.bf16.mxu0 %v1227_v30 }
 0x545   :  { %v1107_v31 = vpop.f32.mrb[4].mxu0 }
 0x546   :  { %1336 = vrcp.f32 %v1107_v31  ;;  %v528_v32 = vpop.f32.mrb[5].mxu0 }
 0x547   :  { %1338 = vrcp.f32 %v528_v32  ;;  %v901_v32 = vld [vmem:[%s1961_s6 + $0x40] sm:$0xff] }
 0x550   :  { %v1337_v33 = vpop.eup %1336 }
 0x551   :  { %v1339_v36 = vpop.eup %1338  ;;  %v540_v38 = vmul.f32 %v1337_v33, %v1335_v15  ;;  %v902_v33 = vld [vmem:[%s1961_s6 + $0x48] sm:$0xff] }
 0x552   :  { %v539_v37 = vmul.f32 %v1339_v36, %v1333_v13  ;;  %v1267_v34 = vpack.c.bf16 %v902_v33, %v901_v32  ;;  %v904_v36 = vld [vmem:[%s1961_s6 + $0x58] sm:$0xff] }
 0x554   :  { %1120 = vmatprep.mubr.msk.f32.mxu0 %vm129_vm0, %v539_v37  ;;  %v1271_v37 = vpack.c.bf16 %v904_v36, %v903_v35 }
 0x555   :  { %1121 = vmatmul.mubr.msk.f32.vlgmr.msra.gmra.mrb[6].mxu0 %vm129_vm0, %v540_v38  ;;  %v905_v38 = vld [vmem:[%s1961_s6 + $0x60] sm:$0xff] }
 0x556   :  { %1230 = vmatpush3.bf16.msra.mxu0 %v1227_v30  ;;  %v900_v30 = vld [vmem:[%s1961_s6 + $0x38] sm:$0xff] }
 0x557   :  { %1232 = vmatprep.subr.bf16.mxu0 %v1231_v39  ;;  %v1263_v31 = vpack.c.bf16 %v900_v30, %v899_v29 }
 0x55a   :  { %1234 = vmatpush3.bf16.msra.mxu0 %v1231_v39  ;;  %v906_v39 = vld [vmem:[%s1961_s6 + $0x68] sm:$0xff] }
 0x55b   :  { %1236 = vmatprep.subr.bf16.mxu0 %v1235_v42  ;;  %v1275_v40 = vpack.c.bf16 %v906_v39, %v905_v38 }
 0x55e   :  { %1238 = vmatpush3.bf16.msra.mxu0 %v1235_v42  ;;  %v908_v42 = vld [vmem:[%s1961_s6 + $0x78] sm:$0xff] }
 0x628   :  { %v1122_v43 = vpop.f32.mrb[6].mxu0 }
 0x629   :  { %v661_v45 = vpop.f32.mrb[7].mxu0 }
 0x62a   :  { %1135 = vmatprep.mubr.msk.f32.mxu0 %vm129_vm0, %v661_v45 }
 0x62b   :  { %1136 = vmatmul.mubr.msk.f32.vlgmr.msra.gmra.mrb[8].mxu0 %vm129_vm0, %v1122_v43  ;;  %v1279_v43 = vpack.c.bf16 %v908_v42, %v907_v41 }
 0x62c   :  { %866 = vmatprep.mubr.f32.mxu0 %v1524_v19 }
 0x6fe   :  { %v1137_v46 = vpop.f32.mrb[8].mxu0 }
 0x6ff   :  { %v1833_v47 = vadd.f32 %v1137_v46, %v1709_v1  ;;  %v748_v49 = vpop.f32.mrb[9].mxu0  ;;  %v785_v1 = vld [vmem:[%s1960_s5 + $0x8] sm:$0xff] }
 0x700   :  { %v1836_v52 = vadd.f32 %v748_v49, %v1707_v0  ;;  %v787_v0 = vld [vmem:[%s1960_s5 + $0x18] sm:$0xff] }
 0x701   :  { %v761_v56 = vmul.f32 %v1833_v47, %v1833_v47  ;;  %v1239_v53 = vpack.c.bf16 %v787_v0, %v785_v1 }
 0x702   :  { %v760_v57 = vmul.f32 %v1836_v52, %v1836_v52 }
 0x703   :  { %v765_v58 = vsel %vm129_vm0, %v761_v56, 0.0  ;;  %1240 = vmatprep.subr.bf16.mxu0 %v1239_v53 }
 0x704   :  { %766 = vadd.xlane.f32.xlu0 %v765_v58  ;;  %v762_v59 = vsel %vm129_vm0, %v760_v57, 0.0  ;;  %1242 = vmatpush1.bf16.msra.mxu0 %v1241_v61 }
 0x705   :  { %763 = vadd.xlane.f32.xlu1 %v762_v59  ;;  %1244 = vmatprep.subr.bf16.mxu0 %v1243_v63 }
 0x708   :  { %1246 = vmatpush1.bf16.msra.mxu0 %v1245_v4 }
 0x709   :  { %1248 = vmatprep.subr.bf16.mxu0 %v1247_v5 }
 0x70c   :  { %1250 = vmatpush1.bf16.msra.mxu0 %v1249_v55 }
 0x791   :  { %v767_v8 = vpop.xlane.xlu0 %766 }
 0x792   :  { %v769_v9 = vmul.f32 0.020833334, %v767_v8  ;;  %v764_v10 = vpop.xlane.xlu1 %763 }
 0x793   :  { %v768_v11 = vmul.f32 0.020833334, %v764_v10 }
 0x794   :  { %v771_v12 = vadd.f32 1e-05, %v769_v9 }
 0x795   :  { %v770_v13 = vadd.f32 1e-05, %v768_v11 }
 0x796   :  { %1340 = vrsqrt.f32 %v771_v12 }
 0x797   :  { %1342 = vrsqrt.f32 %v770_v13 }
 0x7a0   :  { %v1341_v14 = vpop.eup %1340 }
 0x7a1   :  { %v1343_v15 = vpop.eup %1342  ;;  %v775_v20 = vmul.f32 %v1341_v14, %v1833_v47 }
 0x7a2   :  { %v774_v17 = vmul.f32 %v1343_v15, %v1836_v52 }
 0x7a3   :  { %v783_v21 = vmul.f32 %v1025_v16, %v775_v20 }
 0x7a4   :  { %v782_v18 = vmul.f32 %v1025_v16, %v774_v17 }
 0x7a6   :  { %1026 = vmatmul.mubr.msk.f32.vlgmr.msra.gmra.mrb[10].mxu0 %vm129_vm0, %v782_v18 }
 0x7a7   :  { %872 = vmatprep.mubr.f32.mxu0 %v1524_v19  ;;  %v896_v19 = vld [vmem:[%s1961_s6 + $0x18] sm:$0xff]  ;;  %s1530_s6 = smov [#allocation13]  }
 0x7a8   :  { %v1255_v24 = vpack.c.bf16 %v896_v19, %v895_v23  ;;  %s993_s17 = sshll.u32 %s1530_s6, 4  ;;  %s994_s17 = int_to_ptr.vmem [resolvable:$true] %s993_s17 }
 0x7a9   :  { %s1484_s18 = scalar_lea.vmem %s994_s17, 256  ;;  %p1489_p7 = scmp.lt.s32.totalorder %s994_s17, %s994_s17 }
 0x7aa   :  { %1027 = vmatmul.mubr.msk.f32.gmra.mrb[12].mxu0 %vm129_vm0, %v783_v21  ;;  %1256 = vmatprep.subr.bf16.mxu1 %v1255_v24  ;;  %p1485_p6 = scmp.ne.s32.totalorder %s994_s17, %s1484_s18  ;;  %p1490_p8 = scmp.lt.s32.totalorder %s1484_s18, %s1484_s18 }
 0x7ab   :  { %1258 = vmatpush3.bf16.msra.mxu1 %v1255_v24 }
 0x7ac   :  { %1260 = vmatprep.subr.bf16.mxu1 %v1259_v28  ;;  %p1491_p9 = por %p1490_p8, %p1489_p7 }
 0x7ae   :  { %p1492_p10 = pnand %p1491_p9, %p1485_p6 }
 0x7af   :  { %1262 = vmatpush3.bf16.msra.mxu1 %v1259_v28 }
 0x7b0   :  { %1264 = vmatprep.subr.bf16.mxu1 %v1263_v31 }
 0x7b3   :  { %1266 = vmatpush3.bf16.msra.mxu1 %v1263_v31 }
 0x7b4   :  { %1268 = vmatprep.subr.bf16.mxu1 %v1267_v34 }
 0x7b7   :  { %1270 = vmatpush3.bf16.msra.mxu1 %v1267_v34 }
 0x7b8   :  { %1272 = vmatprep.subr.bf16.mxu1 %v1271_v37 }
 0x7bb   :  { %1274 = vmatpush3.bf16.msra.mxu1 %v1271_v37 }
 0x7bc   :  { %1276 = vmatprep.subr.bf16.mxu1 %v1275_v40 }
 0x7bf   :  { %1278 = vmatpush3.bf16.msra.mxu1 %v1275_v40 }
 0x7c0   :  { %1280 = vmatprep.subr.bf16.mxu1 %v1279_v43 }
 0x7c3   :  { %1282 = vmatpush3.bf16.msra.mxu1 %v1279_v43 }
 0x879   :  { %v868_v45 = vpop.f32.mrb[10].mxu0 }
 0x87a   :  { %v879_v46 = vsub.f32 0.0, %v868_v45  ;;  %v870_v49 = vpop.f32.mrb[11].mxu0 }
 0x87c   :  { %v881_v56 = vmul.f32 1.442695, %v879_v46 }
 0x87d   :  { %v874_v57 = vpop.f32.mrb[12].mxu0 }
 0x87e   :  { %1344 = vpow2.f32 %v881_v56  ;;  %v880_v58 = vsub.f32 0.0, %v874_v57  ;;  %v876_v59 = vpop.f32.mrb[13].mxu0 }
 0x880   :  { %v883_v1 = vmul.f32 1.442695, %v880_v58 }
 0x882   :  { %1346 = vpow2.f32 %v883_v1 }
 0x888   :  { %v1345_v0 = vpop.eup %1344 }
 0x889   :  { %v885_v53 = vadd.f32 1.0, %v1345_v0 }
 0x88b   :  { %1348 = vrcp.f32 %v885_v53 }
 0x88c   :  { %v1347_v48 = vpop.eup %1346 }
 0x88d   :  { %v886_v60 = vadd.f32 1.0, %v1347_v48 }
 0x88f   :  { %1350 = vrcp.f32 %v886_v60 }
 0x895   :  { %v1349_v61 = vpop.eup %1348 }
 0x896   :  { %v889_v27 = vmul.f32 %v1349_v61, %v868_v45 }
 0x898   :  { %v891_v62 = vmul.f32 %v889_v27, %v870_v49 }
 0x899   :  { %v1351_v63 = vpop.eup %1350 }
 0x89a   :  { %v890_v2 = vmul.f32 %v1351_v63, %v874_v57  ;;  %1170 = vmatprep.mubr.f32.mxu1 %v891_v62 }
 0x89c   :  { %v892_v3 = vmul.f32 %v890_v2, %v876_v59 }
 0x89e   :  { %1171 = vmatmul.mubr.f32.vlgmr.msra.gmra.mrb[2].mxu1 %v892_v3 }
 0x971   :  { %v1172_v4 = vpop.f32.mrb[2].mxu1 }
 0x972   :  { %v985_v51 = vadd.f32 %v1172_v4, %v1833_v47  ;;  %v975_v54 = vpop.f32.mrb[3].mxu1 }
 0x973   :  { %v984_v5 = vadd.f32 %v975_v54, %v1836_v52 }
 0x974   :  { %987 = vst.msk [vmem:[#allocation13 + $0x8] sm:$0xff] %vm129_vm0, %v985_v51 }
 0x975   :  { %986 = vst.msk [vmem:[#allocation13] sm:$0xff] %vm129_vm0, %v984_v5 }
 0x976   :  { %1495 = shalt.err (!%p1492_p10)
}
 0x977   :  { %s1496_s19 = scalar_lea.hbm %s1967_s12, 256 }
 0x978   :  { %p1497_p11 = scmp.ne.s32.totalorder %s1967_s12, %s1496_s19  ;;  %p1500_p12 = scmp.lt.u32.totalorder %s1496_s19, %s1967_s12 }
 0x97a   :  { %p1502_p13 = pnand %p1500_p12, %p1497_p11 }
 0x97c   :  { %1505 = shalt.err (!%p1502_p13)
}
 0x97d   :  { %999 = dma.vmem_to_hbm [thread:$0]  %s994_s17, 256, %s1967_s12, [#allocation4], %s1518_s15, %s1518_s15, %s1519_s16  }
 0x97e   :  { %1514 = dma.done.wait [#allocation4], 256  }
 0x97f   :  { %1515 = vsyncadd [#allocation4], 4294967040 }
 0x980   :  { %1003 = vsyncpa [#allocation3], 1 }
 0x981   :  { %1004 = vsyncpa [#allocation6], 1 }
 0x982   :  { %1005 = vsyncpa [#allocation9], 1 }
 0x983   :  { %1006 = vsyncpa [#allocation12], 1 }
 0x984   :  { %1007 = vsyncpa [#allocation4], 1 }

</bundles_post_ra>
